<compile_context>
chip_gen: v6e
topology: v6e:2x2x1
jax: 0.10.0
libtpu: 0.0.40
codegen_flags: <defaults>
</compile_context>

<pallas_src>
import functools

import jax
import jax.numpy as jnp
from jax import lax
from jax.experimental import pallas as pl
from jax.experimental.pallas import tpu as pltpu

# ---- config (cfg.coarse_loss.* defaults from GeoTransformer 3DMatch recipe) ----
POS_MARGIN = 0.1
NEG_MARGIN = 1.4
POS_OPTIMAL = 0.1
NEG_OPTIMAL = 1.4
LOG_SCALE = 24.0
POSITIVE_OVERLAP = 0.1


def _round_up(x, m):
    return (x + m - 1) // m * m


def _coarse_matching_loss_kernel(ref_idx_ref, src_idx_ref, corr_ovl_ref,
                                 ref_ref, src_ref, out_ref, *,
                                 n_true, m_true, n_corr, padded):
    ref = ref_ref[...]                                   # (Np, C) bf16
    src = src_ref[...]                                   # (Mp, C) bf16
    n_pad = ref.shape[0]
    m_pad = src.shape[0]

    # pairwise_distance(ref, src, normalized=True) then sqrt:
    # d^2 = 2 - 2 <r, s>; contract dim 1 of both operands (no src.T transpose),
    # bf16 MXU operands with f32 accumulation.
    xy = lax.dot_general(ref, src,
                         dimension_numbers=(((1,), (1,)), ((), ())),
                         preferred_element_type=jnp.float32)          # (Np, Mp)
    feat_dists = jnp.sqrt(jnp.maximum(2.0 - 2.0 * xy, 0.0))

    # Rebuild dense gt-overlap matrix from sparse correspondences in SMEM.
    rows = lax.broadcasted_iota(jnp.int32, (n_pad, m_pad), 0)
    cols = lax.broadcasted_iota(jnp.int32, (n_pad, m_pad), 1)

    def scatter_body(k, acc):
        hit = (rows == ref_idx_ref[k]) & (cols == src_idx_ref[k])
        return jnp.where(hit, corr_ovl_ref[k], acc)

    overlaps = lax.fori_loop(0, n_corr, scatter_body,
                             jnp.zeros((n_pad, m_pad), jnp.float32))

    pos_masks = overlaps > POSITIVE_OVERLAP
    neg_masks = overlaps == 0.0
    if padded:
        valid = (rows < n_true) & (cols < m_true)
        pos_masks = pos_masks & valid
        neg_masks = neg_masks & valid     # pad entries must NOT count as negatives
    else:
        valid = None

    pos_scales = jnp.sqrt(jnp.where(pos_masks, overlaps, 0.0))

    # circle-loss weights (vselect instead of +-1e5 arithmetic masking;
    # identical values: masked entries end up with weight 0 -> logit 0)
    pos_weights = jnp.where(pos_masks,
                            jnp.maximum(feat_dists - POS_OPTIMAL, 0.0),
                            0.0) * pos_scales
    neg_weights = jnp.where(neg_masks,
                            jnp.maximum(NEG_OPTIMAL - feat_dists, 0.0),
                            0.0)

    pos_logits = LOG_SCALE * (feat_dists - POS_MARGIN) * pos_weights
    neg_logits = LOG_SCALE * (NEG_MARGIN - feat_dists) * neg_weights

    def row_col_lse(logits):
        # Single exp pass shared by row and column logsumexp.
        # logits in [0, ~LOG_SCALE*1.9^2] so a global-max shift is f32-safe.
        m = jnp.max(logits)
        e = jnp.exp(logits - m)
        if padded:
            e = jnp.where(valid, e, 0.0)          # pad entries contribute nothing
        row = m + jnp.log(jnp.sum(e, axis=1, keepdims=True))          # (Np, 1)
        col = m + jnp.log(jnp.sum(e, axis=0, keepdims=True))          # (1, Mp)
        return row, col

    loss_pos_row, loss_pos_col = row_col_lse(pos_logits)
    loss_neg_row, loss_neg_col = row_col_lse(neg_logits)

    def softplus(x):
        return jnp.maximum(x, 0.0) + jnp.log1p(jnp.exp(-jnp.abs(x)))

    loss_row = softplus(loss_pos_row + loss_neg_row) / LOG_SCALE       # (Np, 1)
    loss_col = softplus(loss_pos_col + loss_neg_col) / LOG_SCALE       # (1, Mp)

    # anchors having at least one positive and one negative pair
    pos_f = pos_masks.astype(jnp.float32)
    neg_f = neg_masks.astype(jnp.float32)
    row_f = ((jnp.sum(pos_f, axis=1, keepdims=True) > 0.0) &
             (jnp.sum(neg_f, axis=1, keepdims=True) > 0.0)).astype(jnp.float32)
    col_f = ((jnp.sum(pos_f, axis=0, keepdims=True) > 0.0) &
             (jnp.sum(neg_f, axis=0, keepdims=True) > 0.0)).astype(jnp.float32)

    # masked means (matches torch .mean() on the selected entries; empty
    # selection yields NaN just like the reference)
    row_mean = jnp.sum(loss_row * row_f) / jnp.sum(row_f)
    col_mean = jnp.sum(loss_col * col_f) / jnp.sum(col_f)
    loss = 0.5 * (row_mean + col_mean)

    out_ref[...] = jnp.broadcast_to(loss, (1, 1)).astype(jnp.float32)


def coarse_matching_loss(ref_feats, src_feats, gt_node_corr_indices,
                         gt_node_corr_overlaps):
    """Plain-JAX glue (cast/pad only) + one Pallas kernel call. Scalar loss."""
    n, c = ref_feats.shape
    m = src_feats.shape[0]
    k = gt_node_corr_overlaps.shape[0]

    n_pad = _round_up(n, 8)
    m_pad = _round_up(m, 128)
    padded = (n_pad != n) or (m_pad != m)

    # bf16 operands for the MXU (zero-pad rows/cols; accumulation stays f32)
    ref_b = jnp.pad(ref_feats.astype(jnp.bfloat16), ((0, n_pad - n), (0, 0)))
    src_b = jnp.pad(src_feats.astype(jnp.bfloat16), ((0, m_pad - m), (0, 0)))

    ref_idx = gt_node_corr_indices[:, 0].astype(jnp.int32)
    src_idx = gt_node_corr_indices[:, 1].astype(jnp.int32)
    corr_ovl = gt_node_corr_overlaps.astype(jnp.float32)

    kernel = functools.partial(_coarse_matching_loss_kernel,
                               n_true=n, m_true=m, n_corr=k, padded=padded)

    # ~10-12 live (Np,Mp) f32 temporaries + double-buffered bf16 features.
    est = 12 * n_pad * m_pad * 4 + 4 * (n_pad + m_pad) * c * 2 + (2 << 20)
    vmem_limit = min(64 * 1024 * 1024, max(16 * 1024 * 1024, est))

    out = pl.pallas_call(
        kernel,
        out_shape=jax.ShapeDtypeStruct((1, 1), jnp.float32),
        in_specs=[
            pl.BlockSpec(memory_space=pltpu.MemorySpace.SMEM),   # gt ref indices
            pl.BlockSpec(memory_space=pltpu.MemorySpace.SMEM),   # gt src indices
            pl.BlockSpec(memory_space=pltpu.MemorySpace.SMEM),   # gt overlaps (sparse)
            pl.BlockSpec(memory_space=pltpu.MemorySpace.VMEM),   # ref feats (bf16)
            pl.BlockSpec(memory_space=pltpu.MemorySpace.VMEM),   # src feats (bf16)
        ],
        out_specs=pl.BlockSpec(memory_space=pltpu.MemorySpace.VMEM),
        compiler_params=pltpu.CompilerParams(vmem_limit_bytes=vmem_limit),
    )(ref_idx, src_idx, corr_ovl, ref_b, src_b)
    return out[0, 0]


if __name__ == "__main__":
    key = jax.random.PRNGKey(0)
    k1, k2, k3, k4, k5 = jax.random.split(key, 5)

    N, M, C = 32, 48, 32          # small coarse-node counts / feature dim
    NUM_CORR = 20

    ref_feats = jax.random.normal(k1, (N, C), jnp.float32)
    src_feats = jax.random.normal(k2, (M, C), jnp.float32)
    # features are L2-normalized (pairwise_distance(..., normalized=True))
    ref_feats = ref_feats / jnp.linalg.norm(ref_feats, axis=-1, keepdims=True)
    src_feats = src_feats / jnp.linalg.norm(src_feats, axis=-1, keepdims=True)

    gt_ref_idx = jax.random.randint(k3, (NUM_CORR,), 0, N)
    gt_src_idx = jax.random.randint(k4, (NUM_CORR,), 0, M)
    gt_node_corr_indices = jnp.stack([gt_ref_idx, gt_src_idx], axis=1)  # (K, 2)
    gt_node_corr_overlaps = jax.random.uniform(
        k5, (NUM_CORR,), jnp.float32, minval=0.05, maxval=1.0)

    loss_fn = jax.jit(coarse_matching_loss)
    loss = loss_fn(ref_feats, src_feats,
                   gt_node_corr_indices, gt_node_corr_overlaps)
    loss = jax.block_until_ready(loss)
    assert jnp.isfinite(loss), f"non-finite loss: {loss}"
    print("KERNEL_OK")
</pallas_src>

<mosaic_0001>
module attributes {stable_mosaic.version = 11 : i64} {
  func.func @_coarse_matching_loss_kernel(%arg0: memref<20xi32, #tpu.memory_space<smem>>, %arg1: memref<20xi32, #tpu.memory_space<smem>>, %arg2: memref<20xf32, #tpu.memory_space<smem>>, %arg3: memref<32x32xbf16, #tpu.memory_space<vmem>>, %arg4: memref<128x32xbf16, #tpu.memory_space<vmem>>, %arg5: memref<1x1xf32, #tpu.memory_space<vmem>>) attributes {dimension_semantics = [], scalar_prefetch = 0 : i64, scratch_operands = 0 : i64, tpu.core_type = #tpu.core_type<tc>} {
    %c0 = arith.constant 0 : index
    %c0_0 = arith.constant 0 : index
    %0 = vector.load %arg3[%c0, %c0_0] : memref<32x32xbf16, #tpu.memory_space<vmem>>, vector<32x32xbf16>
    %c0_1 = arith.constant 0 : index
    %c0_2 = arith.constant 0 : index
    %1 = vector.load %arg4[%c0_1, %c0_2] : memref<128x32xbf16, #tpu.memory_space<vmem>>, vector<128x32xbf16>
    %cst = arith.constant dense<0.000000e+00> : vector<32x128xf32>
    %2 = tpu.matmul %0, %1, %cst {dimension_numbers = #tpu.dot_dimension_numbers<[1], [1], [0], [0], [0, 0, 1, 0], [], []>} : vector<32x32xbf16>, vector<128x32xbf16>, vector<32x128xf32> -> vector<32x128xf32>
    %cst_3 = arith.constant 2.000000e+00 : f32
    %3 = vector.broadcast %cst_3 : f32 to vector<32x128xf32>
    %4 = arith.mulf %3, %2 : vector<32x128xf32>
    %cst_4 = arith.constant 2.000000e+00 : f32
    %5 = vector.broadcast %cst_4 : f32 to vector<32x128xf32>
    %6 = arith.subf %5, %4 : vector<32x128xf32>
    %cst_5 = arith.constant 0.000000e+00 : f32
    %7 = vector.broadcast %cst_5 : f32 to vector<32x128xf32>
    %8 = arith.maximumf %6, %7 : vector<32x128xf32>
    %9 = math.sqrt %8 : vector<32x128xf32>
    %10 = tpu.iota {dimensions = array<i32: 0>} : vector<32x128xi32>
    %11 = tpu.iota {dimensions = array<i32: 1>} : vector<32x128xi32>
    %cst_6 = arith.constant 0.000000e+00 : f32
    %12 = vector.broadcast %cst_6 : f32 to vector<32x128xf32>
    %c0_i32 = arith.constant 0 : i32
    %c20_i32 = arith.constant 20 : i32
    %13 = arith.addi %c0_i32, %c20_i32 : i32
    %c1_i32 = arith.constant 1 : i32
    %14 = scf.for %arg6 = %c0_i32 to %13 step %c1_i32 iter_args(%arg7 = %12) -> (vector<32x128xf32>)  : i32 {
      %162 = arith.index_cast %arg6 : i32 to index
      %163 = memref.load %arg0[%162] : memref<20xi32, #tpu.memory_space<smem>>
      %164 = vector.broadcast %163 : i32 to vector<32x128xi32>
      %165 = arith.cmpi eq, %10, %164 : vector<32x128xi32>
      %166 = arith.index_cast %arg6 : i32 to index
      %167 = memref.load %arg1[%166] : memref<20xi32, #tpu.memory_space<smem>>
      %168 = vector.broadcast %167 : i32 to vector<32x128xi32>
      %169 = arith.cmpi eq, %11, %168 : vector<32x128xi32>
      %170 = arith.andi %165, %169 : vector<32x128xi1>
      %171 = arith.index_cast %arg6 : i32 to index
      %172 = memref.load %arg2[%171] : memref<20xf32, #tpu.memory_space<smem>>
      %173 = vector.broadcast %172 : f32 to vector<32x128xf32>
      %174 = arith.select %170, %173, %arg7 : vector<32x128xi1>, vector<32x128xf32>
      scf.yield %174 : vector<32x128xf32>
    }
    %c20_i32_7 = arith.constant 20 : i32
    %cst_8 = arith.constant 1.000000e-01 : f32
    %15 = vector.broadcast %cst_8 : f32 to vector<32x128xf32>
    %16 = arith.cmpf ogt, %14, %15 : vector<32x128xf32>
    %cst_9 = arith.constant 0.000000e+00 : f32
    %17 = vector.broadcast %cst_9 : f32 to vector<32x128xf32>
    %18 = arith.cmpf oeq, %14, %17 : vector<32x128xf32>
    %c32_i32 = arith.constant 32 : i32
    %19 = vector.broadcast %c32_i32 : i32 to vector<32x128xi32>
    %20 = arith.cmpi slt, %10, %19 : vector<32x128xi32>
    %c48_i32 = arith.constant 48 : i32
    %21 = vector.broadcast %c48_i32 : i32 to vector<32x128xi32>
    %22 = arith.cmpi slt, %11, %21 : vector<32x128xi32>
    %23 = arith.andi %20, %22 : vector<32x128xi1>
    %24 = arith.andi %16, %23 : vector<32x128xi1>
    %25 = arith.andi %18, %23 : vector<32x128xi1>
    %cst_10 = arith.constant 0.000000e+00 : f32
    %26 = vector.broadcast %cst_10 : f32 to vector<32x128xf32>
    %27 = arith.select %24, %14, %26 : vector<32x128xi1>, vector<32x128xf32>
    %28 = math.sqrt %27 : vector<32x128xf32>
    %cst_11 = arith.constant 1.000000e-01 : f32
    %29 = vector.broadcast %cst_11 : f32 to vector<32x128xf32>
    %30 = arith.subf %9, %29 : vector<32x128xf32>
    %cst_12 = arith.constant 0.000000e+00 : f32
    %31 = vector.broadcast %cst_12 : f32 to vector<32x128xf32>
    %32 = arith.maximumf %30, %31 : vector<32x128xf32>
    %cst_13 = arith.constant 0.000000e+00 : f32
    %33 = vector.broadcast %cst_13 : f32 to vector<32x128xf32>
    %34 = arith.select %24, %32, %33 : vector<32x128xi1>, vector<32x128xf32>
    %35 = arith.mulf %34, %28 : vector<32x128xf32>
    %cst_14 = arith.constant 1.400000e+00 : f32
    %36 = vector.broadcast %cst_14 : f32 to vector<32x128xf32>
    %37 = arith.subf %36, %9 : vector<32x128xf32>
    %cst_15 = arith.constant 0.000000e+00 : f32
    %38 = vector.broadcast %cst_15 : f32 to vector<32x128xf32>
    %39 = arith.maximumf %37, %38 : vector<32x128xf32>
    %cst_16 = arith.constant 0.000000e+00 : f32
    %40 = vector.broadcast %cst_16 : f32 to vector<32x128xf32>
    %41 = arith.select %25, %39, %40 : vector<32x128xi1>, vector<32x128xf32>
    %cst_17 = arith.constant 1.000000e-01 : f32
    %42 = vector.broadcast %cst_17 : f32 to vector<32x128xf32>
    %43 = arith.subf %9, %42 : vector<32x128xf32>
    %cst_18 = arith.constant 2.400000e+01 : f32
    %44 = vector.broadcast %cst_18 : f32 to vector<32x128xf32>
    %45 = arith.mulf %44, %43 : vector<32x128xf32>
    %46 = arith.mulf %45, %35 : vector<32x128xf32>
    %cst_19 = arith.constant 1.400000e+00 : f32
    %47 = vector.broadcast %cst_19 : f32 to vector<32x128xf32>
    %48 = arith.subf %47, %9 : vector<32x128xf32>
    %cst_20 = arith.constant 2.400000e+01 : f32
    %49 = vector.broadcast %cst_20 : f32 to vector<32x128xf32>
    %50 = arith.mulf %49, %48 : vector<32x128xf32>
    %51 = arith.mulf %50, %41 : vector<32x128xf32>
    %52 = vector.shape_cast %46 : vector<32x128xf32> to vector<1x32x128xf32>
    %cst_21 = arith.constant dense<0xFF800000> : vector<1xf32>
    %53 = vector.multi_reduction <maximumf>, %52, %cst_21 [1, 2] : vector<1x32x128xf32> to vector<1xf32>
    %54 = vector.shape_cast %53 : vector<1xf32> to vector<1x1x1xf32>
    %55 = vector.extract %54[0, 0, 0] : f32 from vector<1x1x1xf32>
    %56 = vector.broadcast %55 : f32 to vector<32x128xf32>
    %57 = arith.subf %46, %56 : vector<32x128xf32>
    %58 = math.exp %57 : vector<32x128xf32>
    %cst_22 = arith.constant 0.000000e+00 : f32
    %59 = vector.broadcast %cst_22 : f32 to vector<32x128xf32>
    %60 = arith.select %23, %58, %59 : vector<32x128xi1>, vector<32x128xf32>
    %cst_23 = arith.constant dense<0.000000e+00> : vector<32xf32>
    %61 = vector.multi_reduction <add>, %60, %cst_23 [1] : vector<32x128xf32> to vector<32xf32>
    %62 = vector.shape_cast %61 : vector<32xf32> to vector<32x1xf32>
    %63 = math.log %62 : vector<32x1xf32>
    %64 = vector.broadcast %55 : f32 to vector<32x1xf32>
    %65 = arith.addf %64, %63 : vector<32x1xf32>
    %cst_24 = arith.constant dense<0.000000e+00> : vector<128xf32>
    %66 = vector.multi_reduction <add>, %60, %cst_24 [0] : vector<32x128xf32> to vector<128xf32>
    %67 = vector.shape_cast %66 : vector<128xf32> to vector<1x128xf32>
    %68 = math.log %67 : vector<1x128xf32>
    %69 = vector.broadcast %55 : f32 to vector<1x128xf32>
    %70 = arith.addf %69, %68 : vector<1x128xf32>
    %71 = vector.shape_cast %51 : vector<32x128xf32> to vector<1x32x128xf32>
    %cst_25 = arith.constant dense<0xFF800000> : vector<1xf32>
    %72 = vector.multi_reduction <maximumf>, %71, %cst_25 [1, 2] : vector<1x32x128xf32> to vector<1xf32>
    %73 = vector.shape_cast %72 : vector<1xf32> to vector<1x1x1xf32>
    %74 = vector.extract %73[0, 0, 0] : f32 from vector<1x1x1xf32>
    %75 = vector.broadcast %74 : f32 to vector<32x128xf32>
    %76 = arith.subf %51, %75 : vector<32x128xf32>
    %77 = math.exp %76 : vector<32x128xf32>
    %cst_26 = arith.constant 0.000000e+00 : f32
    %78 = vector.broadcast %cst_26 : f32 to vector<32x128xf32>
    %79 = arith.select %23, %77, %78 : vector<32x128xi1>, vector<32x128xf32>
    %cst_27 = arith.constant dense<0.000000e+00> : vector<32xf32>
    %80 = vector.multi_reduction <add>, %79, %cst_27 [1] : vector<32x128xf32> to vector<32xf32>
    %81 = vector.shape_cast %80 : vector<32xf32> to vector<32x1xf32>
    %82 = math.log %81 : vector<32x1xf32>
    %83 = vector.broadcast %74 : f32 to vector<32x1xf32>
    %84 = arith.addf %83, %82 : vector<32x1xf32>
    %cst_28 = arith.constant dense<0.000000e+00> : vector<128xf32>
    %85 = vector.multi_reduction <add>, %79, %cst_28 [0] : vector<32x128xf32> to vector<128xf32>
    %86 = vector.shape_cast %85 : vector<128xf32> to vector<1x128xf32>
    %87 = math.log %86 : vector<1x128xf32>
    %88 = vector.broadcast %74 : f32 to vector<1x128xf32>
    %89 = arith.addf %88, %87 : vector<1x128xf32>
    %90 = arith.addf %65, %84 : vector<32x1xf32>
    %cst_29 = arith.constant 0.000000e+00 : f32
    %91 = vector.broadcast %cst_29 : f32 to vector<32x1xf32>
    %92 = arith.maximumf %90, %91 : vector<32x1xf32>
    %93 = math.absf %90 : vector<32x1xf32>
    %cst_30 = arith.constant 0.000000e+00 : f32
    %94 = vector.broadcast %cst_30 : f32 to vector<32x1xf32>
    %95 = arith.subf %94, %93 : vector<32x1xf32>
    %96 = math.exp %95 : vector<32x1xf32>
    %97 = math.log1p %96 : vector<32x1xf32>
    %98 = arith.addf %92, %97 : vector<32x1xf32>
    %cst_31 = arith.constant 2.400000e+01 : f32
    %99 = vector.broadcast %cst_31 : f32 to vector<32x1xf32>
    %100 = arith.divf %98, %99 : vector<32x1xf32>
    %101 = arith.addf %70, %89 : vector<1x128xf32>
    %cst_32 = arith.constant 0.000000e+00 : f32
    %102 = vector.broadcast %cst_32 : f32 to vector<1x128xf32>
    %103 = arith.maximumf %101, %102 : vector<1x128xf32>
    %104 = math.absf %101 : vector<1x128xf32>
    %cst_33 = arith.constant 0.000000e+00 : f32
    %105 = vector.broadcast %cst_33 : f32 to vector<1x128xf32>
    %106 = arith.subf %105, %104 : vector<1x128xf32>
    %107 = math.exp %106 : vector<1x128xf32>
    %108 = math.log1p %107 : vector<1x128xf32>
    %109 = arith.addf %103, %108 : vector<1x128xf32>
    %cst_34 = arith.constant 2.400000e+01 : f32
    %110 = vector.broadcast %cst_34 : f32 to vector<1x128xf32>
    %111 = arith.divf %109, %110 : vector<1x128xf32>
    %112 = arith.extui %24 : vector<32x128xi1> to vector<32x128xi32>
    %113 = arith.sitofp %112 : vector<32x128xi32> to vector<32x128xf32>
    %114 = arith.extui %25 : vector<32x128xi1> to vector<32x128xi32>
    %115 = arith.sitofp %114 : vector<32x128xi32> to vector<32x128xf32>
    %cst_35 = arith.constant dense<0.000000e+00> : vector<32xf32>
    %116 = vector.multi_reduction <add>, %113, %cst_35 [1] : vector<32x128xf32> to vector<32xf32>
    %117 = vector.shape_cast %116 : vector<32xf32> to vector<32x1xf32>
    %cst_36 = arith.constant 0.000000e+00 : f32
    %118 = vector.broadcast %cst_36 : f32 to vector<32x1xf32>
    %119 = arith.cmpf ogt, %117, %118 : vector<32x1xf32>
    %cst_37 = arith.constant dense<0.000000e+00> : vector<32xf32>
    %120 = vector.multi_reduction <add>, %115, %cst_37 [1] : vector<32x128xf32> to vector<32xf32>
    %121 = vector.shape_cast %120 : vector<32xf32> to vector<32x1xf32>
    %cst_38 = arith.constant 0.000000e+00 : f32
    %122 = vector.broadcast %cst_38 : f32 to vector<32x1xf32>
    %123 = arith.cmpf ogt, %121, %122 : vector<32x1xf32>
    %124 = arith.andi %119, %123 : vector<32x1xi1>
    %125 = arith.extui %124 : vector<32x1xi1> to vector<32x1xi32>
    %126 = arith.sitofp %125 : vector<32x1xi32> to vector<32x1xf32>
    %cst_39 = arith.constant dense<0.000000e+00> : vector<128xf32>
    %127 = vector.multi_reduction <add>, %113, %cst_39 [0] : vector<32x128xf32> to vector<128xf32>
    %128 = vector.shape_cast %127 : vector<128xf32> to vector<1x128xf32>
    %cst_40 = arith.constant 0.000000e+00 : f32
    %129 = vector.broadcast %cst_40 : f32 to vector<1x128xf32>
    %130 = arith.cmpf ogt, %128, %129 : vector<1x128xf32>
    %cst_41 = arith.constant dense<0.000000e+00> : vector<128xf32>
    %131 = vector.multi_reduction <add>, %115, %cst_41 [0] : vector<32x128xf32> to vector<128xf32>
    %132 = vector.shape_cast %131 : vector<128xf32> to vector<1x128xf32>
    %cst_42 = arith.constant 0.000000e+00 : f32
    %133 = vector.broadcast %cst_42 : f32 to vector<1x128xf32>
    %134 = arith.cmpf ogt, %132, %133 : vector<1x128xf32>
    %135 = arith.andi %130, %134 : vector<1x128xi1>
    %136 = arith.extui %135 : vector<1x128xi1> to vector<1x128xi32>
    %137 = arith.sitofp %136 : vector<1x128xi32> to vector<1x128xf32>
    %138 = arith.mulf %100, %126 : vector<32x1xf32>
    %139 = vector.shape_cast %138 : vector<32x1xf32> to vector<1x32x1xf32>
    %cst_43 = arith.constant dense<0.000000e+00> : vector<1xf32>
    %140 = vector.multi_reduction <add>, %139, %cst_43 [1, 2] : vector<1x32x1xf32> to vector<1xf32>
    %141 = vector.shape_cast %140 : vector<1xf32> to vector<1x1x1xf32>
    %142 = vector.extract %141[0, 0, 0] : f32 from vector<1x1x1xf32>
    %143 = vector.shape_cast %126 : vector<32x1xf32> to vector<1x32x1xf32>
    %cst_44 = arith.constant dense<0.000000e+00> : vector<1xf32>
    %144 = vector.multi_reduction <add>, %143, %cst_44 [1, 2] : vector<1x32x1xf32> to vector<1xf32>
    %145 = vector.shape_cast %144 : vector<1xf32> to vector<1x1x1xf32>
    %146 = vector.extract %145[0, 0, 0] : f32 from vector<1x1x1xf32>
    %147 = arith.divf %142, %146 : f32
    %148 = arith.mulf %111, %137 : vector<1x128xf32>
    %149 = vector.shape_cast %148 : vector<1x128xf32> to vector<1x1x128xf32>
    %cst_45 = arith.constant dense<0.000000e+00> : vector<1xf32>
    %150 = vector.multi_reduction <add>, %149, %cst_45 [1, 2] : vector<1x1x128xf32> to vector<1xf32>
    %151 = vector.shape_cast %150 : vector<1xf32> to vector<1x1x1xf32>
    %152 = vector.extract %151[0, 0, 0] : f32 from vector<1x1x1xf32>
    %153 = vector.shape_cast %137 : vector<1x128xf32> to vector<1x1x128xf32>
    %cst_46 = arith.constant dense<0.000000e+00> : vector<1xf32>
    %154 = vector.multi_reduction <add>, %153, %cst_46 [1, 2] : vector<1x1x128xf32> to vector<1xf32>
    %155 = vector.shape_cast %154 : vector<1xf32> to vector<1x1x1xf32>
    %156 = vector.extract %155[0, 0, 0] : f32 from vector<1x1x1xf32>
    %157 = arith.divf %152, %156 : f32
    %158 = arith.addf %147, %157 : f32
    %cst_47 = arith.constant 5.000000e-01 : f32
    %159 = arith.mulf %cst_47, %158 : f32
    %160 = vector.broadcast %159 : f32 to vector<1x1xf32>
    %c0_48 = arith.constant 0 : index
    %c0_49 = arith.constant 0 : index
    %161 = vector.load %arg5[%c0_48, %c0_49] : memref<1x1xf32, #tpu.memory_space<vmem>>, vector<1x1xf32>
    tpu.vector_store %arg5[%c0_48, %c0_49], %160 {strides = array<i32>} : memref<1x1xf32, #tpu.memory_space<vmem>>, vector<1x1xf32>,
    return
  }
}

</mosaic_0001>

<bundles_post_ra>
// kernel: coarse_matching_loss.1
= control target key start
LH: loop header
LB: loop body
LE: loop exit
PB: predicated region body
PF: predicated region fallthrough
CT: control target
= control target key end

     0   :  { %10 = vsyncpa [#allocation4], 0  ;;  %s1497_s0 = inlined_call_operand.vmem [shape: s32[20], index: 0, kind: input, shape index: {}]   ;;  %s1498_s1 = inlined_call_operand.vmem [shape: s32[20], index: 1, kind: input, shape index: {}]   ;;  %s1499_s2 = inlined_call_operand.vmem [shape: f32[20], index: 2, kind: input, shape index: {}]   ;;  %s1500_s3 = inlined_call_operand.vmem [shape: bf16[32,32], index: 3, kind: input, shape index: {}]   ;;  %s1501_s4 = inlined_call_operand.vmem [shape: bf16[128,32], index: 4, kind: input, shape index: {}]   ;;  %s1502_s5 = inlined_call_operand.hbm [shape: f32[1,1], index: 5, kind: output, shape index: {}]  }
   0x1   :  { %11 = vsyncpa [#allocation6], 0  ;;  %s29_s20 = sshll.u32 %s1498_s1, 4  ;;  %s30_s20 = int_to_ptr.vmem [resolvable:$true] %s29_s20 }
   0x2   :  { %12 = vsyncpa [#allocation3], 0  ;;  %s19_s23 = sshll.u32 %s1497_s0, 4  ;;  %s987_s24 = scalar_lea.vmem %s30_s20, 16  ;;  %s20_s23 = int_to_ptr.vmem [resolvable:$true] %s19_s23 }
   0x3   :  { %p988_p0 = scmp.ne.s32.totalorder %s30_s20, %s987_s24  ;;  %p992_p1 = scmp.lt.s32.totalorder %s30_s20, %s30_s20 }
   0x4   :  { %p993_p2 = scmp.lt.s32.totalorder %s987_s24, %s987_s24 }
   0x6   :  { %p994_p3 = por %p993_p2, %p992_p1 }
   0x8   :  { %p995_p4 = pnand %p994_p3, %p988_p0 }
   0xa   :  { %998 = shalt.err (!%p995_p4)
}
   0xb   :  { %s1089_s25 = smov [#allocation5]   ;;  %s999_s26 = scalar_lea.vmem %s20_s23, 16 }
   0xc   :  { %32 = dma.vmem_to_smem %s30_s20, 16, %s1089_s25, [#allocation6]  }
   0xd   :  { %p1000_p5 = scmp.ne.s32.totalorder %s20_s23, %s999_s26  ;;  %p1004_p6 = scmp.lt.s32.totalorder %s20_s23, %s20_s23 }
   0xe   :  { %p1005_p7 = scmp.lt.s32.totalorder %s999_s26, %s999_s26 }
  0x10   :  { %p1006_p8 = por %p1005_p7, %p1004_p6 }
  0x12   :  { %p1007_p9 = pnand %p1006_p8, %p1000_p5 }
  0x14   :  { %1010 = shalt.err (!%p1007_p9)
}
  0x15   :  { %s1090_s1 = smov [#allocation2]   ;;  %s39_s28 = sshll.u32 %s1499_s2, 4  ;;  %s40_s28 = int_to_ptr.vmem [resolvable:$true] %s39_s28 }
  0x16   :  { %22 = dma.vmem_to_smem %s20_s23, 16, %s1090_s1, [#allocation4]  }
  0x17   :  { %s1011_s29 = scalar_lea.vmem %s40_s28, 16  ;;  %p1016_p11 = scmp.lt.s32.totalorder %s40_s28, %s40_s28 }
  0x18   :  { %p1012_p10 = scmp.ne.s32.totalorder %s40_s28, %s1011_s29  ;;  %p1017_p12 = scmp.lt.s32.totalorder %s1011_s29, %s1011_s29 }
  0x1a   :  { %p1018_p13 = por %p1017_p12, %p1016_p11 }
  0x1c   :  { %p1019_p0 = pnand %p1018_p13, %p1012_p10 }
  0x1e   :  { %1022 = shalt.err (!%p1019_p0)
}
  0x1f   :  { %s1091_s30 = smov [#allocation7]  }
  0x20   :  { %42 = dma.vmem_to_smem %s40_s28, 16, %s1091_s30, [#allocation6]  }
  0x21   :  { %1063 = dma.done.wait [#allocation4], 16  }
  0x22   :  { %1064 = vsyncadd [#allocation4], 4294967280 }
  0x23   :  { %1065 = dma.done.wait [#allocation6], 32  }
  0x24   :  { %1066 = vsyncadd [#allocation6], 4294967264 }
  0x25   :  { %56 = sfence }
  0x26   :  { %v901_v0 = vld [vmem:[%s1501_s4 + $0x38] sm:$0xff]   ;;  %vm128_vm0 = vcmask 261120   ;;  %v902_v1 = vld [vmem:[%s1501_s4 + $0x30] sm:$0xff]   ;;  %v903_v3 = vld [vmem:[%s1501_s4 + $0x28] sm:$0xff]   ;;  %v248_v18 = vlaneseq  ;;  %v1069_v60 = vmov 0.0   ;;  %v1073_v61 = vmov 0.0  }
  0x27   :  { %832 = vmatprep.subr.msk.bf16.mxu0 %vm128_vm0, %v901_v0  ;;  %v157_v2 = vsel %vm128_vm0, %v901_v0, 0  ;;  %v154_v4 = vsel %vm128_vm0, %v902_v1, 0  ;;  %v909_v5 = vld [vmem:[%s1500_s3] sm:$0xff]   ;;  %v151_v6 = vsel %vm128_vm0, %v903_v3, 0  ;;  %v905_v9 = vld [vmem:[%s1501_s4 + $0x18] sm:$0xff]   ;;  %v906_v11 = vld [vmem:[%s1501_s4 + $0x10] sm:$0xff]  }
  0x28   :  { %813 = vmatpush3.bf16.xpose.msra.mxu0 %v157_v2  ;;  %828 = vmatprep.mubr.msk.bf16.mxu0 %vm128_vm0, %v909_v5  ;;  %v904_v7 = vld [vmem:[%s1501_s4 + $0x20] sm:$0xff]   ;;  %v145_v10 = vsel %vm128_vm0, %v905_v9, 0  ;;  %v142_v12 = vsel %vm128_vm0, %v906_v11, 0  ;;  %v907_v13 = vld [vmem:[%s1501_s4 + $0x8] sm:$0xff]   ;;  %v1181_v19 = vshrl.u32 %v248_v18, 7  ;;  %v1192_v23 = vand.u32 127, %v248_v18 }
  0x29   :  { %833 = vmatprep.subr.msk.bf16.mxu0 %vm128_vm0, %v902_v1  ;;  %v148_v8 = vsel %vm128_vm0, %v904_v7, 0  ;;  %v139_v14 = vsel %vm128_vm0, %v907_v13, 0  ;;  %v908_v15 = vld [vmem:[%s1501_s4] sm:$0xff]   ;;  %v910_v17 = vld [vmem:[%s1500_s3 + $0x8] sm:$0xff]   ;;  %v1077_v62 = vmov 0.0   ;;  %v1081_v63 = vmov 0.0  }
  0x2a   :  { %v136_v16 = vsel %vm128_vm0, %v908_v15, 0  ;;  %v1184_v20 = vadd.s32 8, %v1181_v19  ;;  %v1187_v21 = vadd.s32 16, %v1181_v19  ;;  %v1190_v22 = vadd.s32 24, %v1181_v19  ;;  %s1202_s3 = smov 0  }
  0x30   :  { %815 = vmatpush3.bf16.xpose.msra.mxu0 %v154_v4 }
  0x31   :  { %834 = vmatprep.subr.msk.bf16.mxu0 %vm128_vm0, %v903_v3 }
  0x38   :  { %817 = vmatpush3.bf16.xpose.msra.mxu0 %v151_v6 }
  0x39   :  { %835 = vmatprep.subr.msk.bf16.mxu0 %vm128_vm0, %v904_v7 }
  0x40   :  { %819 = vmatpush3.bf16.xpose.msra.mxu0 %v148_v8 }
  0x41   :  { %836 = vmatprep.subr.msk.bf16.mxu0 %vm128_vm0, %v905_v9 }
  0x48   :  { %821 = vmatpush3.bf16.xpose.msra.mxu0 %v145_v10 }
  0x49   :  { %837 = vmatprep.subr.msk.bf16.mxu0 %vm128_vm0, %v906_v11 }
  0x50   :  { %823 = vmatpush3.bf16.xpose.msra.mxu0 %v142_v12 }
  0x51   :  { %838 = vmatprep.subr.msk.bf16.mxu0 %vm128_vm0, %v907_v13 }
  0x58   :  { %825 = vmatpush3.bf16.xpose.msra.mxu0 %v139_v14 }
  0x59   :  { %839 = vmatprep.subr.msk.bf16.mxu0 %vm128_vm0, %v908_v15 }
  0x60   :  { %827 = vmatpush3.bf16.xpose.msra.mxu0 %v136_v16 }
  0x67   :  { %829 = vmatmul.mubr.msk.bf16.vlgmr.msra.gmra.mxu0 %vm128_vm0, %v910_v17 }
 0x127   :  { %v830_v24 = vpop.f32.mrf.mxu0 }
 0x128   :  { %v210_v25 = vmul.f32 2.0, %v830_v24 }
 0x129   :  { %v193_v26 = vpop.f32.mrf.mxu0 }
 0x12a   :  { %v214_v27 = vsub.f32 2.0, %v210_v25  ;;  %v208_v28 = vmul.f32 2.0, %v193_v26 }
 0x12b   :  { %v831_v29 = vpop.f32.mrf.mxu0 }
 0x12c   :  { %v218_v30 = vmax.f32 %v214_v27, 0.0  ;;  %v212_v31 = vsub.f32 2.0, %v208_v28  ;;  %v211_v32 = vmul.f32 2.0, %v831_v29 }
 0x12d   :  { %v196_v33 = vpop.f32.mrf.mxu0 }
 0x12e   :  { %911 = vrsqrt.f32 %v218_v30  ;;  %v216_v34 = vmax.f32 %v212_v31, 0.0  ;;  %v215_v35 = vsub.f32 2.0, %v211_v32  ;;  %v209_v36 = vmul.f32 2.0, %v196_v33 }
 0x12f   :  { %vm236_vm1 = vcmp.eq.f32.partialorder %v218_v30, inf  ;;  %v239_v42 = vand.u32 2147483648, %v218_v30  ;;  %vm238_vm2 = vcmp.eq.f32.partialorder %v218_v30, 0.0 }
 0x130   :  { %913 = vrsqrt.f32 %v216_v34  ;;  %v219_v37 = vmax.f32 %v215_v35, 0.0  ;;  %v213_v38 = vsub.f32 2.0, %v209_v36  ;;  %vm222_vm3 = vcmp.eq.f32.partialorder %v216_v34, inf }
 0x131   :  { %v225_v47 = vand.u32 2147483648, %v216_v34  ;;  %vm224_vm4 = vcmp.eq.f32.partialorder %v216_v34, 0.0 }
 0x132   :  { %915 = vrsqrt.f32 %v219_v37  ;;  %v217_v39 = vmax.f32 %v213_v38, 0.0  ;;  %vm243_vm5 = vcmp.eq.f32.partialorder %v219_v37, inf  ;;  %v246_v52 = vand.u32 2147483648, %v219_v37 }
 0x133   :  { %vm245_vm6 = vcmp.eq.f32.partialorder %v219_v37, 0.0 }
 0x134   :  { %917 = vrsqrt.f32 %v217_v39  ;;  %vm229_vm7 = vcmp.eq.f32.partialorder %v217_v39, inf  ;;  %v232_v57 = vand.u32 2147483648, %v217_v39  ;;  %vm231_vm8 = vcmp.eq.f32.partialorder %v217_v39, 0.0 }
 0x13b   :  { %v912_v40 = vpop.eup %911 }
 0x13c   :  { %v235_v41 = vmul.f32 %v912_v40, %v218_v30 }
 0x13d   :  { %v914_v43 = vpop.eup %913 }
 0x13e   :  { %v237_v44 = vsel %vm236_vm1, %v218_v30, %v235_v41  ;;  %v221_v46 = vmul.f32 %v914_v43, %v216_v34 }
 0x13f   :  { %v1194_v45 = vsel %vm238_vm2, %v239_v42, %v237_v44  ;;  %v916_v48 = vpop.eup %915 }
 0x140   :  { %v223_v49 = vsel %vm222_vm3, %v216_v34, %v221_v46  ;;  %v242_v51 = vmul.f32 %v916_v48, %v219_v37 }
 0x141   :  { %v1196_v50 = vsel %vm224_vm4, %v225_v47, %v223_v49  ;;  %v918_v53 = vpop.eup %917 }
 0x142   :  { %v244_v54 = vsel %vm243_vm5, %v219_v37, %v242_v51  ;;  %v228_v56 = vmul.f32 %v918_v53, %v217_v39 }
 0x143   :  { %v1198_v55 = vsel %vm245_vm6, %v246_v52, %v244_v54 }
 0x144   :  { %v230_v58 = vsel %vm229_vm7, %v217_v39, %v228_v56 }
 0x145   :  { %v1200_v59 = vsel %vm231_vm8, %v232_v57, %v230_v58 }
 0x146 LB: > { %s265_s4 = sld [smem:[#allocation2 + %s1087_s3]]  ;;  %s1087_s3 = sphi %s1202_s3, %s260_s3   ;;  %v1083_v63 = vphi %v1081_v63, %v1082_v63   ;;  %v1079_v62 = vphi %v1077_v62, %v1078_v62   ;;  %v1075_v61 = vphi %v1073_v61, %v1074_v61   ;;  %v1071_v60 = vphi %v1069_v60, %v1070_v60  }
 0x147   : > { %s271_s25 = sld [smem:[#allocation5 + %s1087_s3]] }
 0x148   : > { %s278_s26 = sld [smem:[#allocation7 + %s1087_s3]]  ;;  %s260_s3 = sadd.s32 1, %s1087_s3  }
 0x149   : > { %p257_p1 = scmp.ge.s32.totalorder %s260_s3, 20  }
 0x14a   :  { %vm296_vm5 = vcmp.lt.s32.totalorder (%p257_p1), %v1192_v23, 48  ;;  %v785_v14 = vadd.f32 (%p257_p1), -0.1, %v1196_v50  ;;  %v786_v16 = vadd.f32 (%p257_p1), -0.1, %v1200_v59  ;;  %s1093_s10 = smov (%p257_p1), [#allocation8]  }
 0x14b   :  { %v787_v17 = vadd.f32 (%p257_p1), -0.1, %v1194_v45  ;;  %v788_v18 = vadd.f32 (%p257_p1), -0.1, %v1198_v55  ;;  %v358_v26 = vsub.f32 (%p257_p1), 1.4, %v1200_v59 }
 0x14c   : > { %v266_v0 = vstv %s265_s4  ;;  %v346_v25 = vmax.f32 (%p257_p1), %v786_v16, 0.0  ;;  %v359_v29 = vsub.f32 (%p257_p1), 1.4, %v1194_v45  ;;  %v360_v31 = vsub.f32 (%p257_p1), 1.4, %v1198_v55  ;;  %s746_s11 = sshll.u32 (%p257_p1), %s1093_s10, 4  ;;  %s747_s11 = int_to_ptr.vmem [resolvable:$true] %s746_s11 }
 0x14d   : > { %vm267_vm9 = vcmp.eq.s32.totalorder %v1181_v19, %v266_v0  ;;  %vm268_vm10 = vcmp.eq.s32.totalorder %v1184_v20, %v266_v0  ;;  %v272_v1 = vstv %s271_s25  ;;  %vm269_vm11 = vcmp.eq.s32.totalorder %v1187_v21, %v266_v0  ;;  %s1023_s13 = scalar_lea.vmem (%p257_p1), %s747_s11, 16  ;;  %s1027_s14 = scalar_lea.vmem (%p257_p1), %s747_s11, 32 }
 0x14e   : > { %v279_v2 = vstv %s278_s26  ;;  %vm273_vm12 = vcmp.eq.s32.totalorder %v1192_v23, %v272_v1  ;;  %vm270_vm13 = vcmp.eq.s32.totalorder %v1190_v22, %v266_v0  ;;  %v345_v19 = vmax.f32 (%p257_p1), %v785_v14, 0.0  ;;  %p1024_p2 = scmp.ne.s32.totalorder (%p257_p1), %s747_s11, %s1023_s13  ;;  %p1028_p3 = scmp.lt.s32.totalorder (%p257_p1), %s747_s11, %s747_s11 }
 0x14f   : > { %vm274_vm14 = vmand %vm267_vm9, %vm273_vm12  ;;  %v1284_v20 = vmul.f32 (%p257_p1), 24.0, %v785_v14  ;;  %v357_v22 = vsub.f32 (%p257_p1), 1.4, %v1196_v50  ;;  %v347_v28 = vmax.f32 (%p257_p1), %v787_v17, 0.0  ;;  %v348_v30 = vmax.f32 (%p257_p1), %v788_v18, 0.0  ;;  %p1029_p4 = scmp.lt.s32.totalorder (%p257_p1), %s1027_s14, %s1023_s13 }
 0x150   : > { %vm275_vm15 = vmand %vm268_vm10, %vm273_vm12  ;;  %v1210_v63 = vsel %vm274_vm14, %v279_v2, %v1083_v63   ;;  %v370_v36 = vmul.f32 (%p257_p1), 24.0, %v786_v16  ;;  %v362_v38 = vmax.f32 (%p257_p1), %v358_v26, 0.0  ;;  %v371_v41 = vmul.f32 (%p257_p1), 24.0, %v787_v17 }
 0x151   : > { %v1503_v3 = vmov %v1210_v63  ;;  %vm276_vm0 = vmand %vm269_vm11, %vm273_vm12  ;;  %v1212_v62 = vsel %vm275_vm15, %v279_v2, %v1079_v62   ;;  %259 = sbr.rel (!%p257_p1) target bundleno = 326 (0x146), region = 59  ;;  %v361_v34 = vmax.f32 (%p257_p1), %v357_v22, 0.0  ;;  %v372_v42 = vmul.f32 (%p257_p1), 24.0, %v788_v18  ;;  %p1030_p5 = por (%p257_p1), %p1029_p4, %p1028_p3 }
 0x152   : > { %v1504_v4 = vmov %v1212_v62  ;;  %vm277_vm1 = vmand %vm270_vm13, %vm273_vm12  ;;  %v1214_v61 = vsel %vm276_vm0, %v279_v2, %v1075_v61   ;;  %v1082_v63 = vmov %v1503_v3   ;;  %vm284_vm2 = vcmp.gt.f32.partialorder (%p257_p1), %v1503_v3, 0.1 }
 0x153   : > { %v1505_v5 = vmov %v1214_v61  ;;  %v1216_v60 = vsel %vm277_vm1, %v279_v2, %v1071_v60   ;;  %v1078_v62 = vmov %v1504_v4   ;;  %vm285_vm3 = vcmp.gt.f32.partialorder (%p257_p1), %v1504_v4, 0.1  ;;  %vm1231_vm7 = vmand (%p257_p1), %vm284_vm2, %vm296_vm5  ;;  %p1031_p6 = pnand (%p257_p1), %p1030_p5, %p1024_p2 }
 0x154   : > { %v1506_v6 = vmov %v1216_v60  ;;  %v1074_v61 = vmov %v1505_v5   ;;  %vm286_vm4 = vcmp.gt.f32.partialorder (%p257_p1), %v1505_v5, 0.1  ;;  %vm1237_vm8 = vmand (%p257_p1), %vm285_vm3, %vm296_vm5  ;;  %v1244_v9 = vsel (%p257_p1), %vm1231_vm7, %v1503_v3, 0.0 }
 0x155   : > { %v1070_v60 = vmov %v1506_v6   ;;  %vm287_vm6 = vcmp.gt.f32.partialorder (%p257_p1), %v1506_v6, 0.1  ;;  %vm1248_vm9 = vmand (%p257_p1), %vm286_vm4, %vm296_vm5  ;;  %v1255_v11 = vsel (%p257_p1), %vm1237_vm8, %v1504_v4, 0.0  ;;  %919 = vrsqrt.f32 (%p257_p1), %v1244_v9 }
 0x156   :  { %vm1260_vm10 = vmand %vm287_vm6, %vm296_vm5  ;;  %v1267_v13 = vsel %vm1248_vm9, %v1505_v5, 0.0  ;;  %921 = vrsqrt.f32 %v1255_v11  ;;  %vm288_vm11 = vcmp.eq.f32.partialorder %v1503_v3, 0.0  ;;  %vm315_vm12 = vcmp.eq.f32.partialorder %v1244_v9, inf }
 0x157   :  { %v1274_v15 = vsel %vm1260_vm10, %v1506_v6, 0.0  ;;  %923 = vrsqrt.f32 %v1267_v13  ;;  %vm317_vm13 = vcmp.eq.f32.partialorder %v1244_v9, 0.0  ;;  %vm289_vm14 = vcmp.eq.f32.partialorder %v1504_v4, 0.0  ;;  %vm1311_vm4 = vmand %vm288_vm11, %vm296_vm5 }
 0x158   :  { %925 = vrsqrt.f32 %v1274_v15  ;;  %v318_v21 = vand.u32 2147483648, %v1244_v9  ;;  %vm322_vm15 = vcmp.eq.f32.partialorder %v1255_v11, inf  ;;  %vm324_vm0 = vcmp.eq.f32.partialorder %v1255_v11, 0.0  ;;  %vm1321_vm3 = vmand %vm289_vm14, %vm296_vm5 }
 0x159   :  { %v325_v24 = vand.u32 2147483648, %v1255_v11  ;;  %vm329_vm1 = vcmp.eq.f32.partialorder %v1267_v13, inf  ;;  %v332_v27 = vand.u32 2147483648, %v1267_v13  ;;  %v339_v32 = vand.u32 2147483648, %v1274_v15 }
 0x15a   :  { %v349_v33 = vsel %vm1231_vm7, %v345_v19, 0.0  ;;  %vm290_vm6 = vcmp.eq.f32.partialorder %v1505_v5, 0.0  ;;  %v350_v35 = vsel %vm1237_vm8, %v346_v25, 0.0  ;;  %vm291_vm2 = vcmp.eq.f32.partialorder %v1506_v6, 0.0 }
 0x15b   :  { %v351_v40 = vsel %vm1248_vm9, %v347_v28, 0.0  ;;  %v363_v44 = vmax.f32 %v359_v29, 0.0  ;;  %v352_v47 = vsel %vm1260_vm10, %v348_v30, 0.0  ;;  %vm1332_vm11 = vmand %vm290_vm6, %vm296_vm5  ;;  %v364_v49 = vmax.f32 %v360_v31, 0.0 }
 0x15c   :  { %v377_v50 = vmul.f32 24.0, %v357_v22  ;;  %vm1341_vm14 = vmand %vm291_vm2, %vm296_vm5  ;;  %v365_v54 = vsel %vm1311_vm4, %v361_v34, 0.0  ;;  %v378_v55 = vmul.f32 24.0, %v358_v26  ;;  %v379_v56 = vmul.f32 24.0, %v359_v29 }
 0x15d   :  { %v366_v60 = vsel %vm1321_vm3, %v362_v38, 0.0  ;;  %v380_v61 = vmul.f32 24.0, %v360_v31  ;;  %v367_v1 = vsel %vm1332_vm11, %v363_v44, 0.0  ;;  %v368_v5 = vsel %vm1341_vm14, %v364_v49, 0.0 }
 0x15e   :  { %v381_v16 = vmul.f32 %v377_v50, %v365_v54  ;;  %v382_v19 = vmul.f32 %v378_v55, %v366_v60 }
 0x15f   :  { %v384_v25 = vmul.f32 %v380_v61, %v368_v5 }
 0x160   :  { %v446_v29 = vmax.f32 %v381_v16, %v382_v19 }
 0x162   :  { %v920_v39 = vpop.eup %919 }
 0x163   :  { %v922_v45 = vpop.eup %921  ;;  %v314_v46 = vmul.f32 %v920_v39, %v1244_v9 }
 0x164   :  { %v924_v51 = vpop.eup %923  ;;  %v321_v52 = vmul.f32 %v922_v45, %v1255_v11 }
 0x165   :  { %v926_v57 = vpop.eup %925  ;;  %v316_v58 = vsel %vm315_vm12, %v1244_v9, %v314_v46  ;;  %v328_v59 = vmul.f32 %v924_v51, %v1267_v13  ;;  %vm1523_vm12 = vcmp.eq.f32.partialorder %v1267_v13, 0.0 }
 0x166   :  { %v319_v62 = vsel %vm317_vm13, %v318_v21, %v316_v58  ;;  %v323_v63 = vsel %vm322_vm15, %v1255_v11, %v321_v52  ;;  %v335_v0 = vmul.f32 %v926_v57, %v1274_v15  ;;  %vm1524_vm13 = vcmp.eq.f32.partialorder %v1274_v15, inf }
 0x167   :  { %v326_v2 = vsel %vm324_vm0, %v325_v24, %v323_v63  ;;  %v330_v3 = vsel %vm329_vm1, %v1267_v13, %v328_v59  ;;  %v353_v4 = vmul.f32 %v349_v33, %v319_v62  ;;  %vm1525_vm15 = vcmp.eq.f32.partialorder %v1274_v15, 0.0 }
 0x168   :  { %v333_v6 = vsel %vm1523_vm12, %v332_v27, %v330_v3  ;;  %v337_v9 = vsel %vm1524_vm13, %v1274_v15, %v335_v0  ;;  %v354_v14 = vmul.f32 %v350_v35, %v326_v2  ;;  %v383_v24 = vmul.f32 %v379_v56, %v367_v1 }
 0x169   :  { %v340_v11 = vsel %vm1525_vm15, %v339_v32, %v337_v9  ;;  %v355_v17 = vmul.f32 %v351_v40, %v333_v6  ;;  %v373_v18 = vmul.f32 %v1284_v20, %v353_v4 }
 0x16a   :  { %v356_v21 = vmul.f32 %v352_v47, %v340_v11  ;;  %v374_v22 = vmul.f32 %v370_v36, %v354_v14  ;;  %v447_v30 = vmax.f32 %v383_v24, %v384_v25 }
 0x16b   :  { %v375_v26 = vmul.f32 %v371_v41, %v355_v17 }
 0x16c   :  { %v376_v13 = vmul.f32 %v372_v42, %v356_v21  ;;  %v385_v27 = vmax.f32 %v373_v18, %v374_v22  ;;  %v448_v33 = vmax.f32 %v446_v29, %v447_v30 }
 0x16e   :  { %v386_v28 = vmax.f32 %v375_v26, %v376_v13 }
 0x170   :  { %v387_v31 = vmax.f32 %v385_v27, %v386_v28 }
 0x172   :  { %388 = vmax.xlane.f32.xlu0 %v387_v31 }
 0x176   :  { %449 = vmax.xlane.f32.xlu0 %v448_v33 }
 0x1fb   :  { %v389_v15 = vpop.xlane.xlu0 %388 }
 0x1fc   :  { %v390_v32 = vrot.slane %v389_v15, 4 }
 0x1fe   :  { %v391_v34 = vmax.f32 %v389_v15, %v390_v32 }
 0x1ff   :  { %v450_v35 = vpop.xlane.xlu0 %449 }
 0x200   :  { %v392_v20 = vrot.slane %v391_v34, 2  ;;  %v451_v38 = vrot.slane %v450_v35, 4 }
 0x202   :  { %v452_v39 = vmax.f32 %v450_v35, %v451_v38  ;;  %v393_v36 = vmax.f32 %v391_v34, %v392_v20  ;;  %v1092_v38 = vmov 0.0  }
 0x203   :  { %v795_v8 = vsel %vm1332_vm11, 1.0, %v1092_v38  ;;  %v792_v37 = vsel %vm1260_vm10, 1.0, %v1092_v38  ;;  %v796_v43 = vsel %vm1341_vm14, 1.0, %v1092_v38  ;;  %vm672_vm10 = vcmask 7168  }
 0x204   :  { %v453_v40 = vrot.slane %v452_v39, 2  ;;  %v394_v44 = vrot.slane %v393_v36, 1 }
 0x206   :  { %v395_v41 = vmax.f32 %v393_v36, %v394_v44  ;;  %v454_v42 = vmax.f32 %v452_v39, %v453_v40  ;;  %v789_v39 = vsel %vm1231_vm7, 1.0, %v1092_v38 }
 0x208   :  { %840 = vpush %v395_v41  ;;  %v455_v45 = vrot.slane %v454_v42, 1  ;;  %v790_v41 = vsel %vm1237_vm8, 1.0, %v1092_v38 }
 0x20a   :  { %v456_v46 = vmax.f32 %v454_v42, %v455_v45  ;;  %v793_v42 = vsel %vm1311_vm4, 1.0, %v1092_v38 }
 0x20c   :  { %842 = vpush %v456_v46  ;;  %v794_v46 = vsel %vm1321_vm3, 1.0, %v1092_v38 }
 0x20d   :  { %v655_v12 = vadd.f32 %v794_v46, %v793_v42 }
 0x239   :  { %s841_s1 = spop %840 }
 0x23a   :  { %v1376_v47 = vstv %s841_s1 }
 0x23b   :  { %v398_v49 = vsub.f32 %v373_v18, %v1376_v47  ;;  %v399_v50 = vsub.f32 %v374_v22, %v1376_v47  ;;  %v400_v51 = vsub.f32 %v375_v26, %v1376_v47  ;;  %v401_v52 = vsub.f32 %v376_v13, %v1376_v47 }
 0x23d   :  { %s843_s0 = spop %842  ;;  %v402_v54 = vmul.f32 1.442695, %v398_v49  ;;  %v404_v55 = vmul.f32 1.442695, %v399_v50  ;;  %v406_v56 = vmul.f32 1.442695, %v400_v51 }
 0x23e   :  { %v1382_v57 = vstv %s843_s0  ;;  %v408_v58 = vmul.f32 1.442695, %v401_v52  ;;  %v791_v49 = vsel %vm1248_vm9, 1.0, %v1092_v38 }
 0x23f   :  { %927 = vpow2.f32 %v402_v54  ;;  %v459_v59 = vsub.f32 %v381_v16, %v1382_v57  ;;  %v460_v60 = vsub.f32 %v382_v19, %v1382_v57  ;;  %v461_v61 = vsub.f32 %v383_v24, %v1382_v57 }
 0x240   :  { %929 = vpow2.f32 %v404_v55  ;;  %v462_v62 = vsub.f32 %v384_v25, %v1382_v57 }
 0x241   :  { %v463_v63 = vmul.f32 1.442695, %v459_v59  ;;  %v465_v0 = vmul.f32 1.442695, %v460_v60  ;;  %931 = vpow2.f32 %v406_v56  ;;  %v467_v1 = vmul.f32 1.442695, %v461_v61 }
 0x242   :  { %933 = vpow2.f32 %v408_v58  ;;  %v469_v2 = vmul.f32 1.442695, %v462_v62  ;;  %v645_v56 = vadd.f32 %v790_v41, %v789_v39  ;;  %v656_v60 = vadd.f32 %v795_v8, %v655_v12 }
 0x243   :  { %935 = vpow2.f32 %v463_v63 }
 0x244   :  { %937 = vpow2.f32 %v465_v0  ;;  %v646_v58 = vadd.f32 %v791_v49, %v645_v56  ;;  %v657_v63 = vadd.f32 %v796_v43, %v656_v60 }
 0x245   :  { %939 = vpow2.f32 %v467_v1 }
 0x246   :  { %941 = vpow2.f32 %v469_v2  ;;  %v647_v61 = vadd.f32 %v792_v37, %v646_v58 }
 0x248   :  { %v648_v0 = vrot.slane %v647_v61, 4 }
 0x24c   :  { %v928_v3 = vpop.eup %927 }
 0x24d   :  { %v930_v4 = vpop.eup %929  ;;  %v410_v5 = vsel %vm296_vm5, %v928_v3, 0.0  ;;  %v658_v3 = vrot.slane %v657_v63, 4 }
 0x24e   :  { %v932_v6 = vpop.eup %931  ;;  %414 = vadd.xlane.f32.xlu1 %v410_v5  ;;  %v411_v9 = vsel %vm296_vm5, %v930_v4, 0.0  ;;  %v649_v4 = vadd.f32 %v648_v0, %v647_v61 }
 0x24f   :  { %v934_v14 = vpop.eup %933  ;;  %v434_v16 = vadd.f32 %v411_v9, %v410_v5  ;;  %v412_v17 = vsel %vm296_vm5, %v932_v6, 0.0 }
 0x250   :  { %v936_v11 = vpop.eup %935  ;;  %v413_v25 = vsel %vm296_vm5, %v934_v14, 0.0 }
 0x251   :  { %v938_v18 = vpop.eup %937  ;;  %v471_v19 = vsel %vm296_vm5, %v936_v11, 0.0  ;;  %v435_v21 = vadd.f32 %v434_v16, %v412_v17  ;;  %v650_v16 = vrot.slane %v649_v4, 2 }
 0x252   :  { %v940_v22 = vpop.eup %939  ;;  %416 = vadd.xlane.f32.xlu1 %v411_v9  ;;  %475 = vadd.xlane.f32.xlu0 %v471_v19  ;;  %v472_v24 = vsel %vm296_vm5, %v938_v18, 0.0  ;;  %v659_v9 = vadd.f32 %v658_v3, %v657_v63 }
 0x253   :  { %v942_v26 = vpop.eup %941  ;;  %v495_v13 = vadd.f32 %v472_v24, %v471_v19  ;;  %v436_v27 = vadd.f32 %v435_v21, %v413_v25  ;;  %v473_v28 = vsel %vm296_vm5, %v940_v22, 0.0 }
 0x254   :  { %v474_v31 = vsel %vm296_vm5, %v942_v26, 0.0  ;;  %v660_v19 = vrot.slane %v659_v9, 2 }
 0x255   :  { %v496_v29 = vadd.f32 %v495_v13, %v473_v28  ;;  %v437_v30 = vrot.slane %v436_v27, 4 }
 0x256   :  { %477 = vadd.xlane.f32.xlu1 %v472_v24  ;;  %418 = vadd.xlane.f32.xlu0 %v412_v17 }
 0x257   :  { %v438_v33 = vadd.f32 %v437_v30, %v436_v27  ;;  %v497_v15 = vadd.f32 %v496_v29, %v474_v31  ;;  %v661_v30 = vadd.f32 %v660_v19, %v659_v9 }
 0x259   :  { %v439_v32 = vrot.slane %v438_v33, 2  ;;  %v498_v34 = vrot.slane %v497_v15, 4 }
 0x25a   :  { %479 = vadd.xlane.f32.xlu1 %v473_v28  ;;  %420 = vadd.xlane.f32.xlu0 %v413_v25  ;;  %v651_v25 = vadd.f32 %v650_v16, %v649_v4 }
 0x25b   :  { %v440_v35 = vadd.f32 %v439_v32, %v438_v33  ;;  %v499_v20 = vadd.f32 %v498_v34, %v497_v15 }
 0x25c   :  { %v652_v34 = vrot.slane %v651_v25, 1 }
 0x25d   :  { %v441_v36 = vrot.slane %v440_v35, 1  ;;  %v500_v40 = vrot.slane %v499_v20, 2 }
 0x25e   :  { %481 = vadd.xlane.f32.xlu1 %v474_v31  ;;  %609 = vadd.xlane.f32.xlu0 %v789_v39 }
 0x25f   :  { %v442_v44 = vadd.f32 %v441_v36, %v440_v35  ;;  %v501_v23 = vadd.f32 %v500_v40, %v499_v20 }
 0x261   :  { %943 = vlog2.f32 %v442_v44  ;;  %v502_v45 = vrot.slane %v501_v23, 1 }
 0x262   :  { %611 = vadd.xlane.f32.xlu1 %v790_v41  ;;  %621 = vadd.xlane.f32.xlu0 %v793_v42 }
 0x263   :  { %v503_v7 = vadd.f32 %v502_v45, %v501_v23  ;;  %v662_v45 = vrot.slane %v661_v30, 1 }
 0x265   :  { %945 = vlog2.f32 %v503_v7 }
 0x266   :  { %623 = vadd.xlane.f32.xlu1 %v794_v46  ;;  %613 = vadd.xlane.f32.xlu0 %v791_v49 }
 0x26a   :  { %625 = vadd.xlane.f32.xlu1 %v795_v8  ;;  %615 = vadd.xlane.f32.xlu0 %v792_v37 }
 0x26e   :  { %v944_v50 = vpop.eup %943  ;;  %627 = vadd.xlane.f32.xlu1 %v796_v43 }
 0x26f   :  { %v444_v10 = vmul.f32 0.6931472, %v944_v50  ;;  %v653_v50 = vadd.f32 %v652_v34, %v651_v25 }
 0x271   :  { %v445_v54 = vadd.f32 %v444_v10, %v1376_v47  ;;  %vm654_vm14 = vcmp.gt.f32.partialorder %v653_v50, 0.0 }
 0x272   :  { %v946_v51 = vpop.eup %945 }
 0x273   :  { %v505_v52 = vmul.f32 0.6931472, %v946_v51 }
 0x275   :  { %v506_v48 = vadd.f32 %v505_v52, %v1382_v57 }
 0x277   :  { %v1430_v55 = vadd.f32 %v506_v48, %v445_v54 }
 0x279   :  { %v578_v22 = vand.u32 2147483647, %v1430_v55 }
 0x27b   :  { %v579_v15 = vsub.f32 0.0, %v578_v22 }
 0x27d   :  { %v580_v46 = vmul.f32 1.442695, %v579_v15 }
 0x2d7   :  { %v415_v59 = vpop.xlane.xlu1 %414 }
 0x2d8   :  { %947 = vlog2.f32 %v415_v59 }
 0x2db   :  { %v417_v53 = vpop.xlane.xlu1 %416  ;;  %v476_v62 = vpop.xlane.xlu0 %475 }
 0x2dc   :  { %949 = vlog2.f32 %v417_v53  ;;  %v663_v53 = vadd.f32 %v662_v45, %v661_v30 }
 0x2dd   :  { %951 = vlog2.f32 %v476_v62 }
 0x2de   :  { %vm664_vm12 = vcmp.gt.f32.partialorder %v663_v53, 0.0 }
 0x2df   :  { %v478_v1 = vpop.xlane.xlu1 %477  ;;  %v419_v2 = vpop.xlane.xlu0 %418  ;;  %vm665_vm15 = vmand %vm654_vm14, %vm664_vm12 }
 0x2e0   :  { %953 = vlog2.f32 %v478_v1 }
 0x2e1   :  { %955 = vlog2.f32 %v419_v2 }
 0x2e3   :  { %v480_v5 = vpop.xlane.xlu1 %479  ;;  %v421_v6 = vpop.xlane.xlu0 %420 }
 0x2e4   :  { %957 = vlog2.f32 %v480_v5 }
 0x2e5   :  { %959 = vlog2.f32 %v421_v6  ;;  %v948_v14 = vpop.eup %947 }
 0x2e6   :  { %v423_v21 = vmul.f32 0.6931472, %v948_v14 }
 0x2e7   :  { %v482_v11 = vpop.xlane.xlu1 %481  ;;  %v610_v17 = vpop.xlane.xlu0 %609 }
 0x2e8   :  { %961 = vlog2.f32 %v482_v11  ;;  %vm617_vm5 = vcmp.gt.f32.partialorder %v610_v17, 0.0  ;;  %v430_v31 = vadd.f32 %v423_v21, %v1376_v47 }
 0x2e9   :  { %v950_v18 = vpop.eup %949  ;;  %963 = vpow2.f32 %v580_v46 }
 0x2ea   :  { %v952_v24 = vpop.eup %951  ;;  %v425_v26 = vmul.f32 0.6931472, %v950_v18 }
 0x2eb   :  { %v484_v13 = vmul.f32 0.6931472, %v952_v24  ;;  %v612_v27 = vpop.xlane.xlu1 %611  ;;  %v622_v28 = vpop.xlane.xlu0 %621  ;;  %v1475_v24 = vsel %vm665_vm15, 1.0, %v1092_v38 }
 0x2ec   :  { %vm629_vm7 = vcmp.gt.f32.partialorder %v622_v28, 0.0  ;;  %vm618_vm9 = vcmp.gt.f32.partialorder %v612_v27, 0.0  ;;  %v431_v20 = vadd.f32 %v425_v26, %v1376_v47 }
 0x2ed   :  { %v954_v29 = vpop.eup %953  ;;  %v491_v33 = vadd.f32 %v484_v13, %v1382_v57  ;;  %vm633_vm8 = vmand %vm617_vm5, %vm629_vm7  ;;  %vm710_vm5 = vcmask 1040384  }
 0x2ee   :  { %v956_v32 = vpop.eup %955  ;;  %v486_v35 = vmul.f32 0.6931472, %v954_v29  ;;  %v1440_v41 = vsel %vm633_vm8, 1.0, %v1092_v38  ;;  %v721_v26 = vsel %vm710_vm5, %v1475_v24, 0.0 }
 0x2ef   :  { %v1436_v39 = vadd.f32 %v491_v33, %v430_v31  ;;  %v624_v36 = vpop.xlane.xlu1 %623  ;;  %v614_v40 = vpop.xlane.xlu0 %613  ;;  %v427_v23 = vmul.f32 0.6931472, %v956_v32  ;;  %v689_v52 = vsel %vm672_vm10, %v1440_v41, 0.0 }
 0x2f0   :  { %v492_v44 = vadd.f32 %v486_v35, %v1382_v57  ;;  %vm630_vm0 = vcmp.gt.f32.partialorder %v624_v36, 0.0  ;;  %vm619_vm2 = vcmp.gt.f32.partialorder %v614_v40, 0.0 }
 0x2f1   :  { %v958_v42 = vpop.eup %957  ;;  %v515_v7 = vand.u32 2147483647, %v1436_v39  ;;  %vm634_vm1 = vmand %vm618_vm9, %vm630_vm0  ;;  %v432_v56 = vadd.f32 %v427_v23, %v1376_v47  ;;  %v511_v50 = vmax.f32 %v1436_v39, 0.0 }
 0x2f2   :  { %v960_v49 = vpop.eup %959  ;;  %v1443_v8 = vadd.f32 %v492_v44, %v431_v20  ;;  %v488_v37 = vmul.f32 0.6931472, %v958_v42  ;;  %v1446_v43 = vsel %vm634_vm1, 1.0, %v1092_v38 }
 0x2f3   :  { %v519_v10 = vsub.f32 0.0, %v515_v7  ;;  %v690_v51 = vsel %vm672_vm10, %v1446_v43, 0.0  ;;  %v626_v54 = vpop.xlane.xlu1 %625  ;;  %v429_v58 = vmul.f32 0.6931472, %v960_v49  ;;  %v616_v59 = vpop.xlane.xlu0 %615 }
 0x2f4   :  { %v516_v48 = vand.u32 2147483647, %v1443_v8  ;;  %v493_v12 = vadd.f32 %v488_v37, %v1382_v57  ;;  %vm631_vm3 = vcmp.gt.f32.partialorder %v626_v54, 0.0  ;;  %v691_v1 = vadd.f32 %v690_v51, %v689_v52 }
 0x2f5   :  { %v962_v60 = vpop.eup %961  ;;  %v523_v61 = vmul.f32 1.442695, %v519_v10  ;;  %vm635_vm4 = vmand %vm619_vm2, %vm631_vm3  ;;  %vm620_vm6 = vcmp.gt.f32.partialorder %v616_v59, 0.0  ;;  %v433_v6 = vadd.f32 %v429_v58, %v1376_v47 }
 0x2f6   :  { %v520_v62 = vsub.f32 0.0, %v516_v48  ;;  %v1455_v63 = vadd.f32 %v493_v12, %v432_v56  ;;  %v490_v0 = vmul.f32 0.6931472, %v962_v60  ;;  %v1459_v2 = vsel %vm635_vm4, 1.0, %v1092_v38  ;;  %v964_v13 = vpop.eup %963 }
 0x2f7   :  { %965 = vpow2.f32 %v523_v61  ;;  %v628_v3 = vpop.xlane.xlu1 %627  ;;  %v692_v14 = vsel %vm672_vm10, %v1459_v2, 0.0  ;;  %v582_v30 = vadd.f32 1.0, %v964_v13  ;;  %v585_v46 = vmul.f32 -0.5, %v964_v13 }
 0x2f8   :  { %v525_v4 = vmul.f32 1.442695, %v520_v62  ;;  %v517_v5 = vand.u32 2147483647, %v1455_v63  ;;  %v494_v9 = vadd.f32 %v490_v0, %v1382_v57  ;;  %vm632_vm11 = vcmp.gt.f32.partialorder %v628_v3, 0.0 }
 0x2f9   :  { %vm636_vm13 = vmand %vm620_vm6, %vm632_vm11  ;;  %v693_v17 = vadd.f32 %v692_v14, %v691_v1  ;;  %v512_v12 = vmax.f32 %v1443_v8, 0.0  ;;  %v586_v60 = vadd.f32 1.0, %v585_v46  ;;  %v513_v62 = vmax.f32 %v1455_v63, 0.0 }
 0x2fa   :  { %967 = vpow2.f32 %v525_v4  ;;  %v521_v16 = vsub.f32 0.0, %v517_v5  ;;  %v1466_v11 = vadd.f32 %v494_v9, %v433_v6  ;;  %v1469_v18 = vsel %vm636_vm13, 1.0, %v1092_v38 }
 0x2fb   :  { %v694_v57 = vsel %vm672_vm10, %v1469_v18, 0.0  ;;  %v588_v1 = vand.u32 2147483647, %v964_v13  ;;  %v577_v63 = vmax.f32 %v1430_v55, 0.0 }
 0x2fc   :  { %v527_v19 = vmul.f32 1.442695, %v521_v16  ;;  %v518_v47 = vand.u32 2147483647, %v1466_v11  ;;  %v695_v21 = vadd.f32 %v694_v57, %v693_v17  ;;  %v587_v16 = vmul.f32 %v964_v13, %v586_v60 }
 0x2fd   :  { %vm589_vm0 = vcmp.lt.f32.partialorder %v588_v1, 0.0004427343 }
 0x2fe   :  { %969 = vpow2.f32 %v527_v19  ;;  %v522_v22 = vsub.f32 0.0, %v518_v47  ;;  %696 = vadd.xlane.f32.xlu1 %v695_v21 }
 0x300   :  { %v529_v25 = vmul.f32 1.442695, %v522_v22 }
 0x302   :  { %971 = vpow2.f32 %v529_v25  ;;  %722 = vadd.xlane.f32.xlu1 %v721_v26  ;;  %v514_v26 = vmax.f32 %v1466_v11, 0.0 }
 0x304   :  { %v966_v27 = vpop.eup %965 }
 0x305   :  { %v531_v28 = vadd.f32 1.0, %v966_v27  ;;  %v534_v38 = vmul.f32 -0.5, %v966_v27  ;;  %v537_v36 = vand.u32 2147483647, %v966_v27 }
 0x307   :  { %v968_v29 = vpop.eup %967  ;;  %973 = vlog2.f32 %v531_v28  ;;  %v535_v20 = vadd.f32 1.0, %v534_v38  ;;  %vm538_vm7 = vcmp.lt.f32.partialorder %v537_v36, 0.0004427343 }
 0x308   :  { %v540_v31 = vadd.f32 1.0, %v968_v29  ;;  %v543_v34 = vmul.f32 -0.5, %v968_v29  ;;  %v546_v42 = vand.u32 2147483647, %v968_v29 }
 0x309   :  { %v536_v7 = vmul.f32 %v966_v27, %v535_v20 }
 0x30a   :  { %975 = vlog2.f32 %v540_v31  ;;  %v544_v40 = vadd.f32 1.0, %v543_v34  ;;  %vm547_vm8 = vcmp.lt.f32.partialorder %v546_v42, 0.0004427343 }
 0x30b   :  { %v970_v33 = vpop.eup %969  ;;  %977 = vlog2.f32 %v582_v30 }
 0x30c   :  { %v549_v15 = vadd.f32 1.0, %v970_v33  ;;  %v552_v23 = vmul.f32 -0.5, %v970_v33  ;;  %v545_v37 = vmul.f32 %v968_v29, %v544_v40  ;;  %v555_v48 = vand.u32 2147483647, %v970_v33 }
 0x30e   :  { %979 = vlog2.f32 %v549_v15  ;;  %v553_v54 = vadd.f32 1.0, %v552_v23  ;;  %vm556_vm9 = vcmp.lt.f32.partialorder %v555_v48, 0.0004427343 }
 0x30f   :  { %v972_v32 = vpop.eup %971 }
 0x310   :  { %v558_v35 = vadd.f32 1.0, %v972_v32  ;;  %v561_v56 = vmul.f32 -0.5, %v972_v32  ;;  %v554_v39 = vmul.f32 %v970_v33, %v553_v54  ;;  %v564_v9 = vand.u32 2147483647, %v972_v32 }
 0x312   :  { %981 = vlog2.f32 %v558_v35  ;;  %v562_v4 = vadd.f32 1.0, %v561_v56  ;;  %vm565_vm1 = vcmp.lt.f32.partialorder %v564_v9, 0.0004427343 }
 0x314   :  { %v974_v44 = vpop.eup %973  ;;  %v563_v57 = vmul.f32 %v972_v32, %v562_v4 }
 0x315   :  { %v533_v45 = vmul.f32 0.6931472, %v974_v44 }
 0x317   :  { %v976_v49 = vpop.eup %975  ;;  %v539_v10 = vsel %vm538_vm7, %v536_v7, %v533_v45 }
 0x318   :  { %v978_v51 = vpop.eup %977  ;;  %v542_v52 = vmul.f32 0.6931472, %v976_v49  ;;  %v567_v58 = vadd.f32 %v539_v10, %v511_v50 }
 0x319   :  { %v584_v0 = vmul.f32 0.6931472, %v978_v51 }
 0x31a   :  { %v548_v59 = vsel %vm547_vm8, %v545_v37, %v542_v52  ;;  %v572_v6 = vmul.f32 0.041666668, %v567_v58 }
 0x31b   :  { %v980_v61 = vpop.eup %979  ;;  %v568_v53 = vadd.f32 %v548_v59, %v512_v12  ;;  %v590_v21 = vsel %vm589_vm0, %v587_v16, %v584_v0 }
 0x31c   :  { %v551_v3 = vmul.f32 0.6931472, %v980_v61  ;;  %v668_v22 = vmul.f32 %v1440_v41, %v572_v6 }
 0x31d   :  { %v573_v5 = vmul.f32 0.041666668, %v568_v53 }
 0x31e   :  { %v557_v14 = vsel %vm556_vm9, %v554_v39, %v551_v3  ;;  %v673_v30 = vsel %vm672_vm10, %v668_v22, 0.0 }
 0x31f   :  { %v982_v8 = vpop.eup %981  ;;  %v669_v17 = vmul.f32 %v1446_v43, %v573_v5  ;;  %v569_v19 = vadd.f32 %v557_v14, %v513_v62  ;;  %v591_v43 = vadd.f32 %v590_v21, %v577_v63 }
 0x320   :  { %v560_v47 = vmul.f32 0.6931472, %v982_v8 }
 0x321   :  { %v574_v25 = vmul.f32 0.041666668, %v569_v19  ;;  %v674_v28 = vsel %vm672_vm10, %v669_v17, 0.0  ;;  %v592_v41 = vmul.f32 0.041666668, %v591_v43 }
 0x322   :  { %v566_v27 = vsel %vm565_vm1, %v563_v57, %v560_v47  ;;  %v675_v55 = vadd.f32 %v674_v28, %v673_v30 }
 0x323   :  { %v670_v13 = vmul.f32 %v1459_v2, %v574_v25  ;;  %v570_v29 = vadd.f32 %v566_v27, %v514_v26  ;;  %v709_v34 = vmul.f32 %v1475_v24, %v592_v41 }
 0x325   :  { %v575_v31 = vmul.f32 0.041666668, %v570_v29  ;;  %v676_v33 = vsel %vm672_vm10, %v670_v13, 0.0  ;;  %v711_v2 = vsel %vm710_vm5, %v709_v34, 0.0 }
 0x326   :  { %v677_v38 = vadd.f32 %v676_v33, %v675_v55 }
 0x327   :  { %v671_v15 = vmul.f32 %v1469_v18, %v575_v31 }
 0x329   :  { %v678_v11 = vsel %vm672_vm10, %v671_v15, 0.0  ;;  %vm738_vm10 = vcmask 0  }
 0x32a   :  { %v679_v32 = vadd.f32 %v678_v11, %v677_v38 }
 0x32c   :  { %680 = vadd.xlane.f32.xlu0 %v679_v32 }
 0x330   :  { %712 = vadd.xlane.f32.xlu0 %v711_v2 }
 0x387   :  { %v697_v35 = vpop.xlane.xlu1 %696 }
 0x388   :  { %v698_v20 = vrot.slane %v697_v35, 4 }
 0x38a   :  { %v699_v36 = vadd.f32 %v698_v20, %v697_v35 }
 0x38b   :  { %v723_v10 = vpop.xlane.xlu1 %722 }
 0x38c   :  { %v700_v40 = vrot.slane %v699_v36, 2  ;;  %v724_v52 = vrot.slane %v723_v10, 4 }
 0x38e   :  { %v701_v45 = vadd.f32 %v700_v40, %v699_v36  ;;  %v725_v48 = vadd.f32 %v724_v52, %v723_v10 }
 0x390   :  { %v702_v46 = vrot.slane %v701_v45, 1  ;;  %v726_v58 = vrot.slane %v725_v48, 2 }
 0x392   :  { %v703_v50 = vadd.f32 %v702_v46, %v701_v45  ;;  %v727_v60 = vadd.f32 %v726_v58, %v725_v48 }
 0x394   :  { %v728_v53 = vrot.slane %v727_v60, 1 }
 0x396   :  { %v729_v1 = vadd.f32 %v728_v53, %v727_v60 }
 0x3b5   :  { %v681_v44 = vpop.xlane.xlu0 %680 }
 0x3b6   :  { %v682_v23 = vrot.slane %v681_v44, 4 }
 0x3b8   :  { %v683_v42 = vadd.f32 %v682_v23, %v681_v44 }
 0x3b9   :  { %v713_v24 = vpop.xlane.xlu0 %712 }
 0x3ba   :  { %v684_v18 = vrot.slane %v683_v42, 2  ;;  %v714_v51 = vrot.slane %v713_v24, 4 }
 0x3bc   :  { %v685_v7 = vadd.f32 %v684_v18, %v683_v42  ;;  %v715_v54 = vadd.f32 %v714_v51, %v713_v24 }
 0x3be   :  { %v686_v49 = vrot.slane %v685_v7, 1  ;;  %v716_v12 = vrot.slane %v715_v54, 2 }
 0x3c0   :  { %v687_v37 = vadd.f32 %v686_v49, %v685_v7  ;;  %v717_v59 = vadd.f32 %v716_v12, %v715_v54 }
 0x3c2   :  { %844 = vpush %v687_v37  ;;  %v718_v61 = vrot.slane %v717_v59, 1 }
 0x3c3   :  { %846 = vpush %v703_v50 }
 0x3c4   :  { %v719_v0 = vadd.f32 %v718_v61, %v717_v59 }
 0x3f3   :  { %s845_s27 = spop %844 }
 0x3f4   :  { %s847_s28 = spop %846 }
 0x3f5   :  { %v705_v56 = vstv %s847_s28 }
 0x3f6   :  { %983 = vrcp.f32 %v705_v56 }
 0x403   :  { %v984_v62 = vpop.eup %983 }
 0x404   :  { %848 = vpush %v984_v62 }
 0x405   :  { %850 = vpush %v719_v0 }
 0x406   :  { %852 = vpush %v729_v1 }
 0x435   :  { %s849_s29 = spop %848 }
 0x436   :  { %s851_s30 = spop %850  ;;  %s708_s7 = smul.f32 %s849_s29, %s845_s27 }
 0x437   :  { %s853_s6 = spop %852 }
 0x438   :  { %v731_v3 = vstv %s853_s6 }
 0x439   :  { %985 = vrcp.f32 %v731_v3 }
 0x446   :  { %v986_v39 = vpop.eup %985 }
 0x447   :  { %854 = vpush %v986_v39 }
 0x478   :  { %s855_s2 = spop %854 }
 0x479   :  { %s734_s8 = smul.f32 %s855_s2, %s851_s30 }
 0x47b   :  { %s735_s9 = sadd.f32 %s734_s8, %s708_s7 }
 0x47d   :  { %s736_s12 = smul.f32 0.5, %s735_s9 }
 0x47f   :  { %v737_v4 = vstv %s736_s12 }
 0x480   :  { %739 = vst.msk [vmem:[#allocation8] sm:$0x1] %vm738_vm10, %v737_v4 }
 0x481   :  { %1034 = shalt.err (!%p1031_p6)
}
 0x482   :  { %749 = dma.vmem_to_hbm [thread:$0]  %s747_s11, 16, %s1502_s5, [#allocation3]  }
 0x483   :  { %1067 = dma.done.wait [#allocation3], 16  }
 0x484   :  { %1068 = vsyncadd [#allocation3], 4294967280 }
 0x485   :  { %753 = vsyncpa [#allocation3], 1 }
 0x486   :  { %754 = vsyncpa [#allocation4], 1 }
 0x487   :  { %755 = vsyncpa [#allocation6], 1 }

</bundles_post_ra>
